<compile_context>
chip_gen: v6e
topology: v6e:2x2x1
jax: 0.10.0
libtpu: 0.0.40
codegen_flags: <defaults>
</compile_context>

<pallas_src>
import functools

import jax
import jax.numpy as jnp
from jax import lax
from jax.experimental import pallas as pl
from jax.experimental.pallas import tpu as pltpu

NEG = float(jnp.finfo(jnp.float32).min)  # -inf substitute for max-pool padding


def _round_up(x, m):
    return (x + m - 1) // m * m


def _tokenizer_kernel(p_ref, w_ref, out_ref, padr, rpool, *, H, W, C, Hp, Wp):
    # ---- Conv2d(KxK, stride 1, pad 1, no bias): ONE MXU matmul on im2col ----
    # p_ref: (1, H*W, P) bf16 channel-packed patches (rows ordered (u, v, ci),
    #         zero-padded to P columns); w_ref: (P, C) bf16 matching rows.
    conv = jnp.dot(p_ref[0], w_ref[...], preferred_element_type=jnp.float32)
    conv3 = conv.reshape(H, W, C)          # leading-dim split, minor dim unchanged

    # ---- MaxPool2d(k=3, s=2, p=1): pool along H with strided row loads ----
    # Border fills are redone every grid step so the kernel stays correct when the
    # batch axis is sharded across TensorCores (scratch is per-core).
    padr[0, :, :] = jnp.full((W, C), NEG, jnp.float32)
    padr[H + 1, :, :] = jnp.full((W, C), NEG, jnp.float32)
    padr[1:H + 1, :, :] = conv3
    a0 = padr[pl.ds(0, Hp, stride=2), :, :]   # conv rows 2p-1 (padded at p=0)
    a1 = padr[pl.ds(1, Hp, stride=2), :, :]   # conv rows 2p
    a2 = padr[pl.ds(2, Hp, stride=2), :, :]   # conv rows 2p+1
    rowmax = jnp.maximum(jnp.maximum(a0, a1), a2)                      # (Hp, W, C)

    # ---- pool along W: vectorized sublane-strided loads ----
    rpool[:, 0, :] = jnp.full((Hp, C), NEG, jnp.float32)
    rpool[:, W + 1, :] = jnp.full((Hp, C), NEG, jnp.float32)
    rpool[:, 1:W + 1, :] = rowmax
    c0 = rpool[:, pl.ds(0, Wp, stride=2), :]
    c1 = rpool[:, pl.ds(1, Wp, stride=2), :]
    c2 = rpool[:, pl.ds(2, Wp, stride=2), :]
    pooled = jnp.maximum(jnp.maximum(c0, c1), c2)                      # (Hp, Wp, C)

    # ---- single full-block store; (Hp, Wp, C) -> (Hp*Wp, C) is a leading merge
    # (minor dim C unchanged), not the Wp-way concatenate of the old revision.
    out_ref[0, :, :] = pooled.reshape(Hp * Wp, C).astype(out_ref.dtype)


def tokenizer_forward(x_nchw, conv_w, *, kernel_size=3, stride=1, padding=1,
                      pooling_kernel_size=3, pooling_stride=2, pooling_padding=1):
    assert stride == 1, "kernel hard-codes the stride-1 conv of the default CCT config"
    assert (pooling_kernel_size, pooling_stride, pooling_padding) == (3, 2, 1), \
        "kernel hard-codes the default CCT pooling config"
    B, Cin, Hin, Win = x_nchw.shape
    Cout = conv_w.shape[0]
    K = kernel_size

    H = (Hin + 2 * padding - K) // stride + 1
    W = (Win + 2 * padding - K) // stride + 1
    Hp = (H + 2 * pooling_padding - pooling_kernel_size) // pooling_stride + 1
    Wp = (W + 2 * pooling_padding - pooling_kernel_size) // pooling_stride + 1

    # ---- channel-packed im2col in the wrapper (review item: lane-dense input) ----
    # patches[b, h*W+w, (u*K+v)*Cin + ci] = xpad[b, h+u, w+v, ci]; padded to P cols
    # so each DMA row is a 64-byte-aligned contiguous run.
    KKC = K * K * Cin
    P = _round_up(KKC, 32)
    x = jnp.transpose(x_nchw, (0, 2, 3, 1))                    # NHWC
    xpad = jnp.pad(x, ((0, 0), (padding, padding), (padding, padding), (0, 0)))
    taps = [xpad[:, u:u + H, v:v + W, :] for u in range(K) for v in range(K)]
    patches = jnp.concatenate(taps, axis=-1)                   # (B, H, W, K*K*Cin)
    patches = patches.reshape(B, H * W, KKC)
    patches = jnp.pad(patches, ((0, 0), (0, 0), (0, P - KKC))).astype(jnp.bfloat16)

    # weight (Cout, Cin, K, K) -> (K*K*Cin, Cout), rows ordered (u, v, ci), padded
    # with zero rows to P to match the patch packing.
    wm = jnp.transpose(conv_w, (2, 3, 1, 0)).reshape(KKC, Cout)
    wm = jnp.pad(wm, ((0, P - KKC), (0, 0))).astype(jnp.bfloat16)

    # ---- VMEM budget from the real (lane-padded) block sizes (review item) ----
    pa_blk = _round_up(H * W, 16) * _round_up(P, 128) * 2        # bf16 tiles (16,128)
    w_blk = _round_up(P, 16) * _round_up(Cout, 128) * 2
    out_blk = _round_up(Hp * Wp, 8) * _round_up(Cout, 128) * 4   # f32 tiles (8,128)
    padr_blk = (H + 2) * _round_up(W, 8) * _round_up(Cout, 128) * 4
    rpool_blk = Hp * _round_up(W + 2, 8) * _round_up(Cout, 128) * 4
    est = 2 * (pa_blk + w_blk + out_blk) + padr_blk + rpool_blk
    vmem_limit = int(min(max(2 * est, 32 * 1024 * 1024), 64 * 1024 * 1024))

    cost = pl.CostEstimate(
        flops=int(2 * B * H * W * KKC * Cout + 8 * B * Hp * Wp * Cout),
        transcendentals=0,
        bytes_accessed=int(patches.size * 2 + wm.size * 2 + B * Hp * Wp * Cout * 4),
    )

    out = pl.pallas_call(
        functools.partial(_tokenizer_kernel, H=H, W=W, C=Cout, Hp=Hp, Wp=Wp),
        out_shape=jax.ShapeDtypeStruct((B, Hp * Wp, Cout), jnp.float32),
        grid_spec=pltpu.PrefetchScalarGridSpec(
            num_scalar_prefetch=0,
            grid=(B,),
            in_specs=[
                pl.BlockSpec((1, H * W, P), lambda b: (b, 0, 0)),
                pl.BlockSpec((P, Cout), lambda b: (0, 0)),
            ],
            out_specs=pl.BlockSpec((1, Hp * Wp, Cout), lambda b: (b, 0, 0)),
            scratch_shapes=[
                pltpu.VMEM((H + 2, W, Cout), jnp.float32),    # H-padded conv out
                pltpu.VMEM((Hp, W + 2, Cout), jnp.float32),   # row-pooled, W-padded
            ],
        ),
        compiler_params=pltpu.CompilerParams(
            dimension_semantics=("parallel",),
            vmem_limit_bytes=vmem_limit),
        cost_estimate=cost,
    )(patches, wm)

    # Token order = h * Wp + w, exactly flatten(2,3) + transpose(-2,-1); the kernel
    # already emits the final (B, Hp*Wp, Cout) layout.
    return out


if __name__ == "__main__":
    key = jax.random.PRNGKey(0)
    kx, kw = jax.random.split(key)

    B, Cin, Hin, Win = 2, 3, 16, 16
    Cout, K = 64, 3

    # inputs pre-rounded to bf16-exact values so the bf16 MXU path is exact;
    # real f32 checkpoints would see ~1e-2 relative error vs an f32 reference.
    x = jax.random.normal(kx, (B, Cin, Hin, Win), jnp.float32)
    x = x.astype(jnp.bfloat16).astype(jnp.float32)

    # kaiming_normal_ for Conv2d weight (fan_in mode, gain=sqrt(2))
    fan_in = Cin * K * K
    w = jax.random.normal(kw, (Cout, Cin, K, K), jnp.float32) * jnp.sqrt(2.0 / fan_in)
    w = w.astype(jnp.bfloat16).astype(jnp.float32)

    out = tokenizer_forward(x, w)
    out = jax.block_until_ready(out)

    # pure-JAX reference: conv -> maxpool -> flatten -> transpose
    ref_conv = lax.conv_general_dilated(
        x, w, window_strides=(1, 1), padding=((1, 1), (1, 1)),
        dimension_numbers=("NCHW", "OIHW", "NCHW"))
    ref_pool = lax.reduce_window(
        ref_conv, -jnp.inf, lax.max,
        window_dimensions=(1, 1, 3, 3), window_strides=(1, 1, 2, 2),
        padding=((0, 0), (0, 0), (1, 1), (1, 1)))
    ref = ref_pool.reshape(B, Cout, -1).transpose(0, 2, 1)

    assert out.shape == (B, 64, Cout), out.shape
    err = float(jnp.max(jnp.abs(out - ref)))
    assert jnp.allclose(out, ref, rtol=1e-3, atol=1e-3), f"max abs err {err}"
    print("KERNEL_OK")
</pallas_src>

<mosaic_0001>
module attributes {stable_mosaic.version = 11 : i64} {
  func.func @_tokenizer_kernel(%arg0: i32, %arg1: memref<1x256x32xbf16, #tpu.memory_space<vmem>>, %arg2: memref<32x64xbf16, #tpu.memory_space<vmem>>, %arg3: memref<1x64x64xf32, #tpu.memory_space<vmem>>, %arg4: memref<18x16x64xf32, #tpu.memory_space<vmem>>, %arg5: memref<8x18x64xf32, #tpu.memory_space<vmem>>) attributes {dimension_semantics = [#tpu.dimension_semantics<parallel>], iteration_bounds = array<i64: 2>, scalar_prefetch = 0 : i64, scratch_operands = 2 : i64, tpu.core_type = #tpu.core_type<tc>, window_params = [{transform_indices = @transform_0, window_bounds = array<i64: 1, 256, 32>}, {pipeline_mode = #tpu.pipeline_mode<synchronous>, transform_indices = @transform_1, window_bounds = array<i64: 32, 64>}, {transform_indices = @transform_2, window_bounds = array<i64: 1, 64, 64>}]} {
    %c0 = arith.constant 0 : index
    %c0_0 = arith.constant 0 : index
    %c0_1 = arith.constant 0 : index
    %0 = vector.load %arg1[%c0, %c0_0, %c0_1] : memref<1x256x32xbf16, #tpu.memory_space<vmem>>, vector<1x256x32xbf16>
    %1 = vector.shape_cast %0 : vector<1x256x32xbf16> to vector<256x32xbf16>
    %c0_2 = arith.constant 0 : index
    %c0_3 = arith.constant 0 : index
    %2 = vector.load %arg2[%c0_2, %c0_3] : memref<32x64xbf16, #tpu.memory_space<vmem>>, vector<32x64xbf16>
    %cst = arith.constant dense<0.000000e+00> : vector<256x64xf32>
    %3 = tpu.matmul %1, %2, %cst {dimension_numbers = #tpu.dot_dimension_numbers<[1], [0], [0], [1], [0, 0, 1, 1], [], []>} : vector<256x32xbf16>, vector<32x64xbf16>, vector<256x64xf32> -> vector<256x64xf32>
    %4 = vector.shape_cast %3 : vector<256x64xf32> to vector<16x16x64xf32>
    %cst_4 = arith.constant -3.40282347E+38 : f32
    %5 = vector.broadcast %cst_4 : f32 to vector<16x64xf32>
    %c0_5 = arith.constant 0 : index
    %c0_6 = arith.constant 0 : index
    %c0_7 = arith.constant 0 : index
    %6 = vector.load %arg4[%c0_5, %c0_6, %c0_7] : memref<18x16x64xf32, #tpu.memory_space<vmem>>, vector<1x16x64xf32>
    %7 = vector.shape_cast %6 : vector<1x16x64xf32> to vector<16x64xf32>
    %8 = vector.shape_cast %5 : vector<16x64xf32> to vector<1x16x64xf32>
    tpu.vector_store %arg4[%c0_5, %c0_6, %c0_7], %8 {strides = array<i32>} : memref<18x16x64xf32, #tpu.memory_space<vmem>>, vector<1x16x64xf32>,
    %cst_8 = arith.constant -3.40282347E+38 : f32
    %9 = vector.broadcast %cst_8 : f32 to vector<16x64xf32>
    %c17 = arith.constant 17 : index
    %c0_9 = arith.constant 0 : index
    %c0_10 = arith.constant 0 : index
    %10 = vector.load %arg4[%c17, %c0_9, %c0_10] : memref<18x16x64xf32, #tpu.memory_space<vmem>>, vector<1x16x64xf32>
    %11 = vector.shape_cast %10 : vector<1x16x64xf32> to vector<16x64xf32>
    %12 = vector.shape_cast %9 : vector<16x64xf32> to vector<1x16x64xf32>
    tpu.vector_store %arg4[%c17, %c0_9, %c0_10], %12 {strides = array<i32>} : memref<18x16x64xf32, #tpu.memory_space<vmem>>, vector<1x16x64xf32>,
    %c1 = arith.constant 1 : index
    %c0_11 = arith.constant 0 : index
    %c0_12 = arith.constant 0 : index
    %13 = vector.load %arg4[%c1, %c0_11, %c0_12] : memref<18x16x64xf32, #tpu.memory_space<vmem>>, vector<16x16x64xf32>
    tpu.vector_store %arg4[%c1, %c0_11, %c0_12], %4 {strides = array<i32>} : memref<18x16x64xf32, #tpu.memory_space<vmem>>, vector<16x16x64xf32>,
    %c0_13 = arith.constant 0 : index
    %c0_14 = arith.constant 0 : index
    %c0_15 = arith.constant 0 : index
    %14 = tpu.strided_load %arg4[%c0_13, %c0_14, %c0_15] {strides = array<i32: 2, 1, 1>} : memref<18x16x64xf32, #tpu.memory_space<vmem>>, vector<8x16x64xf32>
    %c1_16 = arith.constant 1 : index
    %c0_17 = arith.constant 0 : index
    %c0_18 = arith.constant 0 : index
    %15 = tpu.strided_load %arg4[%c1_16, %c0_17, %c0_18] {strides = array<i32: 2, 1, 1>} : memref<18x16x64xf32, #tpu.memory_space<vmem>>, vector<8x16x64xf32>
    %c2 = arith.constant 2 : index
    %c0_19 = arith.constant 0 : index
    %c0_20 = arith.constant 0 : index
    %16 = tpu.strided_load %arg4[%c2, %c0_19, %c0_20] {strides = array<i32: 2, 1, 1>} : memref<18x16x64xf32, #tpu.memory_space<vmem>>, vector<8x16x64xf32>
    %17 = arith.maximumf %14, %15 : vector<8x16x64xf32>
    %18 = arith.maximumf %17, %16 : vector<8x16x64xf32>
    %cst_21 = arith.constant -3.40282347E+38 : f32
    %19 = vector.broadcast %cst_21 : f32 to vector<8x64xf32>
    %c0_22 = arith.constant 0 : index
    %c0_23 = arith.constant 0 : index
    %c0_24 = arith.constant 0 : index
    %20 = vector.load %arg5[%c0_22, %c0_23, %c0_24] : memref<8x18x64xf32, #tpu.memory_space<vmem>>, vector<8x1x64xf32>
    %21 = vector.shape_cast %20 : vector<8x1x64xf32> to vector<8x64xf32>
    %22 = vector.shape_cast %19 : vector<8x64xf32> to vector<8x1x64xf32>
    tpu.vector_store %arg5[%c0_22, %c0_23, %c0_24], %22 {strides = array<i32>} : memref<8x18x64xf32, #tpu.memory_space<vmem>>, vector<8x1x64xf32>,
    %cst_25 = arith.constant -3.40282347E+38 : f32
    %23 = vector.broadcast %cst_25 : f32 to vector<8x64xf32>
    %c0_26 = arith.constant 0 : index
    %c17_27 = arith.constant 17 : index
    %c0_28 = arith.constant 0 : index
    %24 = vector.load %arg5[%c0_26, %c17_27, %c0_28] : memref<8x18x64xf32, #tpu.memory_space<vmem>>, vector<8x1x64xf32>
    %25 = vector.shape_cast %24 : vector<8x1x64xf32> to vector<8x64xf32>
    %26 = vector.shape_cast %23 : vector<8x64xf32> to vector<8x1x64xf32>
    tpu.vector_store %arg5[%c0_26, %c17_27, %c0_28], %26 {strides = array<i32>} : memref<8x18x64xf32, #tpu.memory_space<vmem>>, vector<8x1x64xf32>,
    %c0_29 = arith.constant 0 : index
    %c1_30 = arith.constant 1 : index
    %c0_31 = arith.constant 0 : index
    %27 = vector.load %arg5[%c0_29, %c1_30, %c0_31] : memref<8x18x64xf32, #tpu.memory_space<vmem>>, vector<8x16x64xf32>
    tpu.vector_store %arg5[%c0_29, %c1_30, %c0_31], %18 {strides = array<i32>} : memref<8x18x64xf32, #tpu.memory_space<vmem>>, vector<8x16x64xf32>,
    %c0_32 = arith.constant 0 : index
    %c0_33 = arith.constant 0 : index
    %c0_34 = arith.constant 0 : index
    %28 = tpu.strided_load %arg5[%c0_32, %c0_33, %c0_34] {strides = array<i32: 1, 2, 1>} : memref<8x18x64xf32, #tpu.memory_space<vmem>>, vector<8x8x64xf32>
    %c0_35 = arith.constant 0 : index
    %c1_36 = arith.constant 1 : index
    %c0_37 = arith.constant 0 : index
    %29 = tpu.strided_load %arg5[%c0_35, %c1_36, %c0_37] {strides = array<i32: 1, 2, 1>} : memref<8x18x64xf32, #tpu.memory_space<vmem>>, vector<8x8x64xf32>
    %c0_38 = arith.constant 0 : index
    %c2_39 = arith.constant 2 : index
    %c0_40 = arith.constant 0 : index
    %30 = tpu.strided_load %arg5[%c0_38, %c2_39, %c0_40] {strides = array<i32: 1, 2, 1>} : memref<8x18x64xf32, #tpu.memory_space<vmem>>, vector<8x8x64xf32>
    %31 = arith.maximumf %28, %29 : vector<8x8x64xf32>
    %32 = arith.maximumf %31, %30 : vector<8x8x64xf32>
    %33 = vector.shape_cast %32 : vector<8x8x64xf32> to vector<64x64xf32>
    %c0_41 = arith.constant 0 : index
    %c0_42 = arith.constant 0 : index
    %c0_43 = arith.constant 0 : index
    %34 = vector.load %arg3[%c0_41, %c0_42, %c0_43] : memref<1x64x64xf32, #tpu.memory_space<vmem>>, vector<1x64x64xf32>
    %35 = vector.shape_cast %34 : vector<1x64x64xf32> to vector<64x64xf32>
    %36 = vector.shape_cast %33 : vector<64x64xf32> to vector<1x64x64xf32>
    tpu.vector_store %arg3[%c0_41, %c0_42, %c0_43], %36 {strides = array<i32>} : memref<1x64x64xf32, #tpu.memory_space<vmem>>, vector<1x64x64xf32>,
    return
  }
  func.func @transform_0(%arg0: i32) -> (i32, i32, i32) {
    %c0_i32 = arith.constant 0 : i32
    %c0_i32_0 = arith.constant 0 : i32
    %c0_i32_1 = arith.constant 0 : i32
    return %arg0, %c0_i32, %c0_i32_0 : i32, i32, i32
  }
  func.func @transform_1(%arg0: i32) -> (i32, i32) {
    %c0_i32 = arith.constant 0 : i32
    %c0_i32_0 = arith.constant 0 : i32
    %c0_i32_1 = arith.constant 0 : i32
    return %c0_i32, %c0_i32_0 : i32, i32
  }
  func.func @transform_2(%arg0: i32) -> (i32, i32, i32) {
    %c0_i32 = arith.constant 0 : i32
    %c0_i32_0 = arith.constant 0 : i32
    %c0_i32_1 = arith.constant 0 : i32
    return %arg0, %c0_i32, %c0_i32_0 : i32, i32, i32
  }
}

</mosaic_0001>

<bundles_post_ra>
// kernel: tpu_custom_call.1
= control target key start
LH: loop header
LB: loop body
LE: loop exit
PB: predicated region body
PF: predicated region fallthrough
CT: control target
= control target key end

     0   :  { %7 = vsyncpa [#allocation5], 0  ;;  %s1254_s0 = inlined_call_operand.vmem [shape: bf16[2,256,32], index: 0, kind: input, shape index: {}]   ;;  %s1255_s1 = inlined_call_operand.vmem [shape: bf16[32,64], index: 1, kind: input, shape index: {}]   ;;  %s1256_s2 = inlined_call_operand.hbm [shape: f32[2,64,64], index: 2, kind: output, shape index: {}]  }
   0x1   :  { %9 = vsyncpa [#allocation5 + $0x1], 0  ;;  %s1028_s9 = smov 0   ;;  %s1030_s10 = smov 0  }
   0x2   :  { %s1032_s11 = smov 0   ;;  %s1034_s12 = smov 0  }
   0x3 LB: > { %s1049_s13 = sadd.s32 4294967295, %s1007_s12   ;;  %s781_s14 = sadd.s32 4294967294, %s1007_s12   ;;  %s1007_s12 = sphi %s1034_s12, %s1262_s12   ;;  %s1003_s11 = sphi %s1032_s11, %s1261_s11   ;;  %s999_s10 = sphi %s1030_s10, %s1260_s10   ;;  %s995_s9 = sphi %s1028_s9, %s1259_s9  }
   0x4   : > { %s1053_s15 = sadd.s32 1, %s1007_s12   ;;  %s69_s16 = sadd.s32 1, %s1003_s11 }
   0x5   : > { %s66_s17 = ssub.s32 %s1007_s12, %s1053_s15  ;;  %p79_p0 = scmp.ne.s32.totalorder %s1003_s11, %s999_s10 }
   0x6   : > { %p67_p1 = scmp.eq.s32.totalorder %s66_s17, 0  ;;  %p80_p2 = scmp.eq.s32.totalorder %s1049_s13, 1 }
   0x7   : > { %p85_p3 = scmp.ne.s32.totalorder %s999_s10, %s995_s9  ;;  %p86_p4 = scmp.eq.s32.totalorder %s781_s14, 1 }
   0x8   : > { %s1064_s18 = scalar_select %p67_p1, %s1003_s11, %s69_s16  }
   0x9   : > { %p1066_p5 = por %p80_p2, %p79_p0  ;;  %p1070_p6 = por %p86_p4, %p85_p3 }
   0xa   : > { %p784_p7 = scmp.ge.s32.totalorder %s1007_s12, 1  ;;  %p115_p8 = scmp.lt.s32.totalorder %s1007_s12, 3 }
   0xc   : > { %p116_p9 = pnand %p784_p7, %p115_p8 }
   0xd   : > { %p137_p10 = scmp.lt.s32.totalorder (!%p116_p9), %s1049_s13, 1  ;;  %s134_s30 = sand.u32 (!%p116_p9), 1, %s999_s10  }
   0xe   : > { %119 = sbr.rel (%p116_p9) target bundleno = 291 (0x123), region = 28  ;;  %s1161_s3 = sshll.u32 (!%p116_p9), %s134_s30, 6 }
   0xf   : > { %s1173_s4 = scalar_lea.vmem (!%p116_p9), [#allocation4], %s1161_s3  ;;  %s828_s5 = sshll.u32 (!%p116_p9), %s1049_s13, 10 }
  0x10   : > { %s719_s6 = sshll.u32 (!%p116_p9), %s1173_s4, 4  ;;  %s1214_s14 = scalar_lea.sflag (!%p116_p9), [#allocation5], %s134_s30  ;;  %s1206_s6 = int_to_ptr.vmem [resolvable:$true] %s719_s6 }
  0x11   : > { %s947_s16 = scalar_lea.vmem (!%p116_p9), %s1206_s6, 1024  ;;  %s1010_s17 = smov (!%p116_p9), [#allocation4]  }
  0x12   : > { %p948_p11 = scmp.ne.s32.totalorder (!%p116_p9), %s1206_s6, %s947_s16  ;;  %s951_s21 = sshll.u32 (!%p116_p9), %s1010_s17, 4  ;;  %s952_s21 = int_to_ptr.vmem [resolvable:$false] %s951_s21 }
  0x13   : > { %v929_v0 = vld [vmem:[%s1255_s1 + $0x8] sm:$0xff]   ;;  %v930_v1 = vld [vmem:[%s1255_s1] sm:$0xff]   ;;  %s138_s25 = scalar_select %p137_p10, %s1049_s13, 1  ;;  %vm271_vm0 = vcmask 261120   ;;  %vm481_vm1 = vcmask 523264   ;;  %vm601_vm2 = vcmask 516096  }
  0x14   : > { %847 = vmatprep.subr.bf16.mxu0 %v929_v0  ;;  %883 = vmatprep.subr.bf16.mxu1 %v929_v0  ;;  %v1009_v18 = vmov -3.4028235e+38   ;;  %s1204_s13 = scalar_lea.hbm %s1256_s2, %s828_s5  ;;  %p949_p12 = pnand %p948_p11, %p1066_p5 }
  0x15   : > { %848 = vmatpush3.bf16.msra.mxu0 %v929_v0  ;;  %885 = vmatpush3.bf16.msra.mxu1 %v929_v0  ;;  %s827_s26 = sshll.u32 %s138_s25, 7  ;;  %482 = vst.msk [vmem:[#allocation2] sm:$0xff] %vm481_vm1, %v1009_v18  ;;  %483 = vst.msk [vmem:[#allocation2 + $0x8] sm:$0xff] %vm481_vm1, %v1009_v18  ;;  %s953_s22 = scalar_lea.vmem %s952_s21, 2048 }
  0x16   : > { %849 = vmatprep.subr.bf16.mxu0 %v930_v1  ;;  %884 = vmatprep.subr.bf16.mxu1 %v930_v1  ;;  %s1087_s29 = scalar_lea.vmem %s1254_s0, %s827_s26  ;;  %602 = vst.msk [vmem:[#allocation3] sm:$0x1] %vm601_vm2, %v1009_v18  ;;  %603 = vst.msk [vmem:[#allocation3 + $0x18] sm:$0x1] %vm601_vm2, %v1009_v18  ;;  %p950_p13 = pneg %p949_p12 }
  0x17   : > { %v931_v2 = vld [vmem:[%s1087_s29] sm:$0xff]   ;;  %v933_v4 = vld [vmem:[%s1087_s29 + $0x8] sm:$0xff]   ;;  %v935_v6 = vld [vmem:[%s1087_s29 + $0x10] sm:$0xff]   ;;  %604 = vst.msk [vmem:[#allocation3 + $0x30] sm:$0x1] %vm601_vm2, %v1009_v18  ;;  %p954_p0 = scmp.lt.s32.totalorder %s1206_s6, %s952_s21  ;;  %p955_p1 = scmp.lt.s32.totalorder %s953_s22, %s947_s16 }
  0x18   : > { %v932_v3 = vld [vmem:[%s1087_s29 + $0x40] sm:$0xff]   ;;  %851 = vmatprep.mubr.msk.bf16.mxu0 %vm271_vm0, %v931_v2  ;;  %v934_v5 = vld [vmem:[%s1087_s29 + $0x48] sm:$0xff]   ;;  %v936_v7 = vld [vmem:[%s1087_s29 + $0x50] sm:$0xff]   ;;  %605 = vst.msk [vmem:[#allocation3 + $0x48] sm:$0x1] %vm601_vm2, %v1009_v18 }
  0x19   : > { %850 = vmatpush3.bf16.msra.mxu0 %v930_v1  ;;  %886 = vmatpush3.bf16.msra.mxu1 %v930_v1  ;;  %v937_v8 = vld [vmem:[%s1087_s29 + $0x18] sm:$0xff]   ;;  %v939_v10 = vld [vmem:[%s1087_s29 + $0x20] sm:$0xff]   ;;  %v941_v12 = vld [vmem:[%s1087_s29 + $0x28] sm:$0xff]   ;;  %606 = vst.msk [vmem:[#allocation3 + $0x60] sm:$0x1] %vm601_vm2, %v1009_v18  ;;  %p956_p2 = por %p955_p1, %p954_p0 }
  0x1a   : > { %867 = vmatprep.mubr.msk.bf16.mxu1 %vm271_vm0, %v932_v3  ;;  %v938_v9 = vld [vmem:[%s1087_s29 + $0x58] sm:$0xff]   ;;  %v940_v11 = vld [vmem:[%s1087_s29 + $0x60] sm:$0xff]   ;;  %v942_v13 = vld [vmem:[%s1087_s29 + $0x68] sm:$0xff]   ;;  %607 = vst.msk [vmem:[#allocation3 + $0x78] sm:$0x1] %vm601_vm2, %v1009_v18 }
  0x1b   : > { %v943_v14 = vld [vmem:[%s1087_s29 + $0x30] sm:$0xff]   ;;  %v945_v16 = vld [vmem:[%s1087_s29 + $0x38] sm:$0xff]   ;;  %608 = vst.msk [vmem:[#allocation3 + $0x90] sm:$0x1] %vm601_vm2, %v1009_v18  ;;  %609 = vst.msk [vmem:[#allocation3 + $0xa8] sm:$0x1] %vm601_vm2, %v1009_v18  ;;  %p957_p3 = pnand %p956_p2, %p950_p13 }
  0x1c   : > { %852 = vmatmul.mubr.msk.bf16.vlgmr.msra.gmra.mxu0 %vm271_vm0, %v933_v4  ;;  %868 = vmatmul.mubr.msk.bf16.vlgmr.msra.gmra.mxu1 %vm271_vm0, %v934_v5  ;;  %v944_v15 = vld [vmem:[%s1087_s29 + $0x70] sm:$0xff]   ;;  %v946_v17 = vld [vmem:[%s1087_s29 + $0x78] sm:$0xff]   ;;  %v520_v27 = vld [vmem:[#allocation2] sm:$0xff] }
  0x1d   : > { %855 = vmatprep.mubr.msk.bf16.mxu0 %vm271_vm0, %v935_v6  ;;  %871 = vmatprep.mubr.msk.bf16.mxu1 %vm271_vm0, %v936_v7  ;;  %v521_v35 = vld [vmem:[#allocation2 + $0x8] sm:$0xff] }
  0x24   : > { %856 = vmatmul.mubr.msk.bf16.gmra.mxu0 %vm271_vm0, %v937_v8  ;;  %872 = vmatmul.mubr.msk.bf16.gmra.mxu1 %vm271_vm0, %v938_v9 }
  0x25   : > { %859 = vmatprep.mubr.msk.bf16.mxu0 %vm271_vm0, %v939_v10  ;;  %875 = vmatprep.mubr.msk.bf16.mxu1 %vm271_vm0, %v940_v11 }
  0x2c   : > { %860 = vmatmul.mubr.msk.bf16.gmra.mxu0 %vm271_vm0, %v941_v12  ;;  %876 = vmatmul.mubr.msk.bf16.gmra.mxu1 %vm271_vm0, %v942_v13 }
  0x2d   : > { %863 = vmatprep.mubr.msk.bf16.mxu0 %vm271_vm0, %v943_v14  ;;  %879 = vmatprep.mubr.msk.bf16.mxu1 %vm271_vm0, %v944_v15 }
  0x34   : > { %864 = vmatmul.mubr.msk.bf16.gmra.mxu0 %vm271_vm0, %v945_v16  ;;  %880 = vmatmul.mubr.msk.bf16.gmra.mxu1 %vm271_vm0, %v946_v17 }
  0xdc   : > { %v853_v19 = vpop.f32.mrf.mxu0  ;;  %v869_v20 = vpop.f32.mrf.mxu1 }
  0xdd   : > { %490 = vst.msk [vmem:[#allocation2 + $0x20] sm:$0xff] %vm481_vm1, %v853_v19  ;;  %506 = vst.msk [vmem:[#allocation2 + $0xa0] sm:$0xff] %vm481_vm1, %v869_v20 }
  0xde   : > { %v354_v21 = vpop.f32.mrf.mxu0  ;;  %v418_v22 = vpop.f32.mrf.mxu1 }
  0xdf   : > { %488 = vst.msk [vmem:[#allocation2 + $0x10] sm:$0xff] %vm481_vm1, %v354_v21  ;;  %504 = vst.msk [vmem:[#allocation2 + $0x90] sm:$0xff] %vm481_vm1, %v418_v22 }
  0xe0   : > { %v854_v23 = vpop.f32.mrf.mxu0  ;;  %v870_v24 = vpop.f32.mrf.mxu1 }
  0xe1   : > { %491 = vst.msk [vmem:[#allocation2 + $0x28] sm:$0xff] %vm481_vm1, %v854_v23  ;;  %507 = vst.msk [vmem:[#allocation2 + $0xa8] sm:$0xff] %vm481_vm1, %v870_v24 }
  0xe2   : > { %v357_v25 = vpop.f32.mrf.mxu0  ;;  %v421_v26 = vpop.f32.mrf.mxu1 }
  0xe3   : > { %489 = vst.msk [vmem:[#allocation2 + $0x18] sm:$0xff] %vm481_vm1, %v357_v25  ;;  %505 = vst.msk [vmem:[#allocation2 + $0x98] sm:$0xff] %vm481_vm1, %v421_v26 }
  0xe4   : > { %v857_v28 = vpop.f32.mrf.mxu0  ;;  %v873_v29 = vpop.f32.mrf.mxu1  ;;  %v522_v34 = vld [vmem:[#allocation2 + $0x20] sm:$0xff] }
  0xe5   : > { %494 = vst.msk [vmem:[#allocation2 + $0x40] sm:$0xff] %vm481_vm1, %v857_v28  ;;  %510 = vst.msk [vmem:[#allocation2 + $0xc0] sm:$0xff] %vm481_vm1, %v873_v29  ;;  %v1142_v49 = vld [vmem:[#allocation2 + $0xa0] sm:$0xff] }
  0xe6   : > { %v536_v30 = vld [vmem:[#allocation2 + $0x10] sm:$0xff]  ;;  %v370_v31 = vpop.f32.mrf.mxu0  ;;  %v434_v33 = vpop.f32.mrf.mxu1 }
  0xe7   : > { %v569_v32 = vmax.f32 %v520_v27, %v536_v30  ;;  %492 = vst.msk [vmem:[#allocation2 + $0x30] sm:$0xff] %vm481_vm1, %v370_v31  ;;  %508 = vst.msk [vmem:[#allocation2 + $0xb0] sm:$0xff] %vm481_vm1, %v434_v33  ;;  %v544_v31 = vld [vmem:[#allocation2 + $0x90] sm:$0xff] }
  0xe8   : > { %v858_v36 = vpop.f32.mrf.mxu0  ;;  %v874_v38 = vpop.f32.mrf.mxu1  ;;  %v523_v43 = vld [vmem:[#allocation2 + $0x28] sm:$0xff] }
  0xe9   : > { %v585_v37 = vmax.f32 %v569_v32, %v522_v34  ;;  %495 = vst.msk [vmem:[#allocation2 + $0x48] sm:$0xff] %vm481_vm1, %v858_v36  ;;  %511 = vst.msk [vmem:[#allocation2 + $0xc8] sm:$0xff] %vm481_vm1, %v874_v38  ;;  %v1151_v62 = vld [vmem:[#allocation2 + $0xa8] sm:$0xff] }
  0xea   : > { %v537_v39 = vld [vmem:[#allocation2 + $0x18] sm:$0xff]  ;;  %v373_v40 = vpop.f32.mrf.mxu0  ;;  %v437_v42 = vpop.f32.mrf.mxu1 }
  0xeb   : > { %618 = vst.msk [vmem:[#allocation3 + $0x1] sm:$0xff] %vm481_vm1, %v585_v37  ;;  %v570_v41 = vmax.f32 %v521_v35, %v537_v39  ;;  %493 = vst.msk [vmem:[#allocation2 + $0x38] sm:$0xff] %vm481_vm1, %v373_v40 }
  0xec   : > { %509 = vst.msk [vmem:[#allocation2 + $0xb8] sm:$0xff] %vm481_vm1, %v437_v42  ;;  %v861_v44 = vpop.f32.mrf.mxu0  ;;  %v877_v46 = vpop.f32.mrf.mxu1  ;;  %v524_v53 = vld [vmem:[#allocation2 + $0x40] sm:$0xff] }
  0xed   : > { %v586_v45 = vmax.f32 %v570_v41, %v523_v43  ;;  %498 = vst.msk [vmem:[#allocation2 + $0x60] sm:$0xff] %vm481_vm1, %v861_v44  ;;  %514 = vst.msk [vmem:[#allocation2 + $0xe0] sm:$0xff] %vm481_vm1, %v877_v46  ;;  %v532_v56 = vld [vmem:[#allocation2 + $0xc0] sm:$0xff] }
  0xee   : > { %v538_v47 = vld [vmem:[#allocation2 + $0x30] sm:$0xff]  ;;  %v386_v48 = vpop.f32.mrf.mxu0  ;;  %v450_v52 = vpop.f32.mrf.mxu1 }
  0xef   : > { %619 = vst.msk [vmem:[#allocation3 + $0x9] sm:$0xff] %vm481_vm1, %v586_v45  ;;  %v571_v50 = vmax.f32 %v522_v34, %v538_v47  ;;  %v546_v51 = vld [vmem:[#allocation2 + $0xb0] sm:$0xff]  ;;  %496 = vst.msk [vmem:[#allocation2 + $0x50] sm:$0xff] %vm481_vm1, %v386_v48  ;;  %v545_v48 = vld [vmem:[#allocation2 + $0x98] sm:$0xff] }
  0xf0   : > { %v579_v54 = vmax.f32 %v1142_v49, %v546_v51  ;;  %512 = vst.msk [vmem:[#allocation2 + $0xd0] sm:$0xff] %vm481_vm1, %v450_v52  ;;  %v862_v55 = vpop.f32.mrf.mxu0  ;;  %v878_v58 = vpop.f32.mrf.mxu1  ;;  %v525_v2 = vld [vmem:[#allocation2 + $0x48] sm:$0xff] }
  0xf1   : > { %v587_v57 = vmax.f32 %v571_v50, %v524_v53  ;;  %499 = vst.msk [vmem:[#allocation2 + $0x68] sm:$0xff] %vm481_vm1, %v862_v55  ;;  %515 = vst.msk [vmem:[#allocation2 + $0xe8] sm:$0xff] %vm481_vm1, %v878_v58  ;;  %v533_v5 = vld [vmem:[#allocation2 + $0xc8] sm:$0xff] }
  0xf2   : > { %v595_v59 = vmax.f32 %v579_v54, %v532_v56  ;;  %v539_v60 = vld [vmem:[#allocation2 + $0x38] sm:$0xff]  ;;  %v389_v61 = vpop.f32.mrf.mxu0  ;;  %v453_v1 = vpop.f32.mrf.mxu1 }
  0xf3   : > { %620 = vst.msk [vmem:[#allocation3 + $0x19] sm:$0xff] %vm481_vm1, %v587_v57  ;;  %v572_v63 = vmax.f32 %v523_v43, %v539_v60  ;;  %v547_v0 = vld [vmem:[#allocation2 + $0xb8] sm:$0xff]  ;;  %497 = vst.msk [vmem:[#allocation2 + $0x58] sm:$0xff] %vm481_vm1, %v389_v61 }
  0xf4   : > { %628 = vst.msk [vmem:[#allocation3 + $0x79] sm:$0xff] %vm481_vm1, %v595_v59  ;;  %v580_v3 = vmax.f32 %v1151_v62, %v547_v0  ;;  %513 = vst.msk [vmem:[#allocation2 + $0xd8] sm:$0xff] %vm481_vm1, %v453_v1  ;;  %v865_v4 = vpop.f32.mrf.mxu0  ;;  %v881_v7 = vpop.f32.mrf.mxu1  ;;  %v526_v17 = vld [vmem:[#allocation2 + $0x60] sm:$0xff] }
  0xf5   : > { %v588_v6 = vmax.f32 %v572_v63, %v525_v2  ;;  %502 = vst.msk [vmem:[#allocation2 + $0x80] sm:$0xff] %vm481_vm1, %v865_v4  ;;  %518 = vst.msk [vmem:[#allocation2 + $0x100] sm:$0xff] %vm481_vm1, %v881_v7  ;;  %v534_v21 = vld [vmem:[#allocation2 + $0xe0] sm:$0xff] }
  0xf6   : > { %v596_v8 = vmax.f32 %v580_v3, %v533_v5  ;;  %v540_v9 = vld [vmem:[#allocation2 + $0x50] sm:$0xff]  ;;  %v402_v10 = vpop.f32.mrf.mxu0  ;;  %v634_v11 = vld [vmem:[#allocation3] ss:$2 sm:$0xff]  ;;  %v650_v12 = vld [vmem:[#allocation3 + $0x1] ss:$2 sm:$0xff]  ;;  %v466_v15 = vpop.f32.mrf.mxu1 }
  0xf7   : > { %621 = vst.msk [vmem:[#allocation3 + $0x21] sm:$0xff] %vm481_vm1, %v588_v6  ;;  %v573_v13 = vmax.f32 %v524_v53, %v540_v9  ;;  %v548_v14 = vld [vmem:[#allocation2 + $0xd0] sm:$0xff]  ;;  %500 = vst.msk [vmem:[#allocation2 + $0x70] sm:$0xff] %vm481_vm1, %v402_v10  ;;  %v681_v16 = vmax.f32 %v634_v11, %v650_v12 }
  0xf8   : > { %629 = vst.msk [vmem:[#allocation3 + $0x81] sm:$0xff] %vm481_vm1, %v596_v8  ;;  %v581_v18 = vmax.f32 %v532_v56, %v548_v14  ;;  %516 = vst.msk [vmem:[#allocation2 + $0xf0] sm:$0xff] %vm481_vm1, %v466_v15  ;;  %v866_v19 = vpop.f32.mrf.mxu0  ;;  %v666_v20 = vld [vmem:[#allocation3 + $0x2] ss:$2 sm:$0xff]  ;;  %v882_v23 = vpop.f32.mrf.mxu1 }
  0xf9   : > { %v589_v22 = vmax.f32 %v573_v13, %v526_v17  ;;  %503 = vst.msk [vmem:[#allocation2 + $0x88] sm:$0xff] %vm481_vm1, %v866_v19  ;;  %v689_v24 = vmax.f32 %v681_v16, %v666_v20  ;;  %519 = vst.msk [vmem:[#allocation2 + $0x108] sm:$0xff] %vm481_vm1, %v882_v23  ;;  %v527_v32 = vld [vmem:[#allocation2 + $0x68] sm:$0xff] }
  0xfa   : > { %v597_v25 = vmax.f32 %v581_v18, %v534_v21  ;;  %v541_v26 = vld [vmem:[#allocation2 + $0x58] sm:$0xff]  ;;  %v405_v27 = vpop.f32.mrf.mxu0  ;;  %v469_v30 = vpop.f32.mrf.mxu1  ;;  %v535_v35 = vld [vmem:[#allocation2 + $0xe8] sm:$0xff] }
  0xfb   : > { %622 = vst.msk [vmem:[#allocation3 + $0x31] sm:$0xff] %vm481_vm1, %v589_v22  ;;  %v574_v28 = vmax.f32 %v525_v2, %v541_v26  ;;  %v549_v29 = vld [vmem:[#allocation2 + $0xd8] sm:$0xff]  ;;  %501 = vst.msk [vmem:[#allocation2 + $0x78] sm:$0xff] %vm481_vm1, %v405_v27 }
  0xfc   : > { %697 = vst.msk [vmem:[%s1173_s4] sm:$0xff] %vm481_vm1, %v689_v24  ;;  %630 = vst.msk [vmem:[#allocation3 + $0x91] sm:$0xff] %vm481_vm1, %v597_v25  ;;  %v582_v33 = vmax.f32 %v533_v5, %v549_v29  ;;  %v528_v34 = vld [vmem:[#allocation2 + $0x80] sm:$0xff] }
  0xfd   : > { %517 = vst.msk [vmem:[#allocation2 + $0xf8] sm:$0xff] %vm481_vm1, %v469_v30  ;;  %v590_v36 = vmax.f32 %v574_v28, %v527_v32  ;;  %v577_v37 = vmax.f32 %v528_v34, %v544_v31  ;;  %v567_v54 = vld [vmem:[#allocation2 + $0x100] sm:$0xff] }
  0xfe   : > { %v598_v38 = vmax.f32 %v582_v33, %v535_v35  ;;  %v542_v39 = vld [vmem:[#allocation2 + $0x70] sm:$0xff]  ;;  %v636_v40 = vld [vmem:[#allocation3 + $0x18] ss:$2 sm:$0xff]  ;;  %v652_v41 = vld [vmem:[#allocation3 + $0x19] ss:$2 sm:$0xff] }
  0xff   : > { %623 = vst.msk [vmem:[#allocation3 + $0x39] sm:$0xff] %vm481_vm1, %v590_v36  ;;  %v593_v42 = vmax.f32 %v577_v37, %v1142_v49  ;;  %v575_v43 = vmax.f32 %v526_v17, %v542_v39  ;;  %v550_v44 = vld [vmem:[#allocation2 + $0xf0] sm:$0xff]  ;;  %v644_v45 = vld [vmem:[#allocation3 + $0x78] ss:$2 sm:$0xff]  ;;  %v660_v46 = vld [vmem:[#allocation3 + $0x79] ss:$2 sm:$0xff]  ;;  %v682_v47 = vmax.f32 %v636_v40, %v652_v41 }
 0x100   : > { %631 = vst.msk [vmem:[#allocation3 + $0x99] sm:$0xff] %vm481_vm1, %v598_v38  ;;  %v583_v50 = vmax.f32 %v534_v21, %v550_v44  ;;  %v529_v51 = vld [vmem:[#allocation2 + $0x88] sm:$0xff]  ;;  %v686_v53 = vmax.f32 %v644_v45, %v660_v46 }
 0x101   : > { %v668_v52 = vld [vmem:[#allocation3 + $0x1a] ss:$2 sm:$0xff]  ;;  %626 = vst.msk [vmem:[#allocation3 + $0x61] sm:$0xff] %vm481_vm1, %v593_v42  ;;  %v591_v55 = vmax.f32 %v575_v43, %v528_v34  ;;  %v578_v56 = vmax.f32 %v529_v51, %v545_v48 }
 0x102   : > { %v676_v49 = vld [vmem:[#allocation3 + $0x7a] ss:$2 sm:$0xff]  ;;  %v690_v57 = vmax.f32 %v682_v47, %v668_v52  ;;  %v599_v58 = vmax.f32 %v583_v50, %v567_v54 }
 0x103   : > { %v543_v59 = vld [vmem:[#allocation2 + $0x78] sm:$0xff]  ;;  %v694_v60 = vmax.f32 %v686_v53, %v676_v49  ;;  %624 = vst.msk [vmem:[#allocation3 + $0x49] sm:$0xff] %vm481_vm1, %v591_v55  ;;  %v594_v61 = vmax.f32 %v578_v56, %v1151_v62  ;;  %v568_v2 = vld [vmem:[#allocation2 + $0x108] sm:$0xff] }
 0x104   : > { %v576_v63 = vmax.f32 %v527_v32, %v543_v59  ;;  %v551_v0 = vld [vmem:[#allocation2 + $0xf8] sm:$0xff]  ;;  %698 = vst.msk [vmem:[%s1173_s4 + $0x8] sm:$0xff] %vm481_vm1, %v690_v57  ;;  %632 = vst.msk [vmem:[#allocation3 + $0xa9] sm:$0xff] %vm481_vm1, %v599_v58 }
 0x105   : > { %v584_v1 = vmax.f32 %v535_v35, %v551_v0  ;;  %702 = vst.msk [vmem:[%s1173_s4 + $0x28] sm:$0xff] %vm481_vm1, %v694_v60  ;;  %627 = vst.msk [vmem:[#allocation3 + $0x69] sm:$0xff] %vm481_vm1, %v594_v61 }
 0x106   : > { %v592_v3 = vmax.f32 %v576_v63, %v529_v51  ;;  %v638_v5 = vld [vmem:[#allocation3 + $0x30] ss:$2 sm:$0xff]  ;;  %v654_v6 = vld [vmem:[#allocation3 + $0x31] ss:$2 sm:$0xff] }
 0x107   : > { %v600_v4 = vmax.f32 %v584_v1, %v568_v2  ;;  %v646_v62 = vld [vmem:[#allocation3 + $0x90] ss:$2 sm:$0xff]  ;;  %v662_v7 = vld [vmem:[#allocation3 + $0x91] ss:$2 sm:$0xff]  ;;  %v683_v8 = vmax.f32 %v638_v5, %v654_v6 }
 0x108   : > { %625 = vst.msk [vmem:[#allocation3 + $0x51] sm:$0xff] %vm481_vm1, %v592_v3  ;;  %v670_v9 = vld [vmem:[#allocation3 + $0x32] ss:$2 sm:$0xff]  ;;  %v687_v10 = vmax.f32 %v646_v62, %v662_v7 }
 0x109   : > { %633 = vst.msk [vmem:[#allocation3 + $0xb1] sm:$0xff] %vm481_vm1, %v600_v4  ;;  %v678_v11 = vld [vmem:[#allocation3 + $0x92] ss:$2 sm:$0xff]  ;;  %v691_v12 = vmax.f32 %v683_v8, %v670_v9 }
 0x10a   : > { %v695_v13 = vmax.f32 %v687_v10, %v678_v11 }
 0x10b   : > { %699 = vst.msk [vmem:[%s1173_s4 + $0x10] sm:$0xff] %vm481_vm1, %v691_v12 }
 0x10c   : > { %v642_v14 = vld [vmem:[#allocation3 + $0x60] ss:$2 sm:$0xff]  ;;  %v658_v15 = vld [vmem:[#allocation3 + $0x61] ss:$2 sm:$0xff]  ;;  %703 = vst.msk [vmem:[%s1173_s4 + $0x30] sm:$0xff] %vm481_vm1, %v695_v13 }
 0x10d   : > { %v685_v16 = vmax.f32 %v642_v14, %v658_v15  ;;  %v674_v19 = vld [vmem:[#allocation3 + $0x62] ss:$2 sm:$0xff] }
 0x10f   : > { %v640_v17 = vld [vmem:[#allocation3 + $0x48] ss:$2 sm:$0xff]  ;;  %v656_v18 = vld [vmem:[#allocation3 + $0x49] ss:$2 sm:$0xff]  ;;  %v693_v23 = vmax.f32 %v685_v16, %v674_v19 }
 0x110   : > { %v648_v20 = vld [vmem:[#allocation3 + $0xa8] ss:$2 sm:$0xff]  ;;  %v664_v21 = vld [vmem:[#allocation3 + $0xa9] ss:$2 sm:$0xff]  ;;  %v684_v22 = vmax.f32 %v640_v17, %v656_v18 }
 0x111   : > { %v672_v24 = vld [vmem:[#allocation3 + $0x4a] ss:$2 sm:$0xff]  ;;  %v688_v25 = vmax.f32 %v648_v20, %v664_v21  ;;  %701 = vst.msk [vmem:[%s1173_s4 + $0x20] sm:$0xff] %vm481_vm1, %v693_v23 }
 0x112   : > { %v680_v26 = vld [vmem:[#allocation3 + $0xaa] ss:$2 sm:$0xff]  ;;  %v692_v27 = vmax.f32 %v684_v22, %v672_v24 }
 0x113   : > { %v696_v28 = vmax.f32 %v688_v25, %v680_v26 }
 0x114   : > { %700 = vst.msk [vmem:[%s1173_s4 + $0x18] sm:$0xff] %vm481_vm1, %v692_v27 }
 0x115   : > { %704 = vst.msk [vmem:[%s1173_s4 + $0x38] sm:$0xff] %vm481_vm1, %v696_v28 }
 0x116   : > { %960 = shalt.err (!%p957_p3)
}
 0x117   : > { %s961_s23 = scalar_lea.hbm %s1204_s13, 1024  ;;  %s965_s26 = scalar_lea.hbm %s1256_s2, 2048 }
 0x118   : > { %p962_p4 = scmp.ne.s32.totalorder %s1204_s13, %s961_s23  ;;  %p966_p9 = scmp.lt.s32.totalorder %s1204_s13, %s1256_s2 }
 0x119   : > { %p967_p10 = scmp.lt.s32.totalorder %s965_s26, %s961_s23 }
 0x11a   : > { %p963_p7 = pnand %p962_p4, %p1066_p5 }
 0x11b   : > { %p968_p11 = por %p967_p10, %p966_p9 }
 0x11c   : > { %p964_p8 = pneg %p963_p7 }
 0x11e   : > { %p969_p12 = pnand %p968_p11, %p964_p8 }
 0x120   : > { %972 = shalt.err (!%p969_p12)
}
 0x121   : > { %s1011_s29 = smov 128   ;;  %s1012_s30 = smov 8  }
 0x122   : > { %887 = dma.vmem_to_hbm [thread:$0]  (%p1066_p5), %s1206_s6, 1024, %s1204_s13, %s1214_s14, %s1011_s29, %s1011_s29, %s1012_s30  }
 0x123 PF: > { %p893_p13 = scmp.ge.s32.totalorder %s1007_s12, 2  ;;  %s734_s3 = sand.u32 1, %s995_s9  }
 0x124   : > { %s735_s4 = scalar_lea.sflag [#allocation5], %s734_s3 }
 0x125   : > { %p890_p0 = pnand %p893_p13, %p1070_p6 }
 0x127   : > { %p891_p1 = pneg %p890_p0 }
 0x129   : > { %990 = dma.done.wait (%p891_p1), %s735_s4, 1024  }
 0x12a   : > { %992 = vsyncadd (%p891_p1), %s735_s4, 4294966272  ;;  %p12_p2 = scmp.ge.s32.totalorder %s1053_s15, 4   ;;  %s1259_s9 = smov %s999_s10 }
 0x12b   : > { %s1260_s10 = smov %s1003_s11  ;;  %s1261_s11 = smov %s1064_s18 }
 0x12c   : > { %s1262_s12 = smov %s1053_s15  ;;  %14 = sbr.rel (!%p12_p2) target bundleno = 3 (0x3), region = 89 }
 0x131   :  { %740 = vsyncpa [#allocation5], 1 }
 0x132   :  { %742 = vsyncpa [#allocation5 + $0x1], 1 }

</bundles_post_ra>
